<compile_context>
chip_gen: v6e
topology: v6e:2x2x1
jax: 0.10.0
libtpu: 0.0.40
codegen_flags: <defaults>
</compile_context>

<pallas_src>
import functools

import jax
import jax.numpy as jnp
from jax.experimental import pallas as pl
from jax.experimental.pallas import tpu as pltpu


def _round_up(x, m):
    return ((x + m - 1) // m) * m


def _mlp_kernel(x_ref, w1_ref, b1_ref, w2_ref, b2_ref, o_ref, *, compute_dtype):
    # Cast x in VMEM right before the first dot (no extra HBM pass).
    x = x_ref[...].astype(compute_dtype)
    # fc1: (tb, In) @ (In, H) -> f32 accumulate; bias + ReLU in f32.
    h = jnp.dot(x, w1_ref[...], preferred_element_type=jnp.float32)
    h = jnp.maximum(h + b1_ref[...], 0.0)
    # fc2: (tb, H) @ (H, Out) -> f32 accumulate; bias + sigmoid in f32.
    y = jnp.dot(h.astype(w2_ref.dtype), w2_ref[...],
                preferred_element_type=jnp.float32)
    o_ref[...] = jax.nn.sigmoid(y + b2_ref[...])


def agriculture_model_forward(x, w1, b1, w2, b2, *,
                              block_batch=4096,
                              compute_dtype=jnp.bfloat16):
    """x: (B, input_size); w1: (input_size, hidden); w2: (hidden, output)."""
    # TODO(synk): for very small batches this is launch-overhead bound; a
    # caller could dispatch to plain fused XLA below a batch-size threshold.
    B, in_size = x.shape
    hidden = w1.shape[1]
    out_size = w2.shape[1]

    # Batch tile: multiple of 8 sublanes, capped so the grid keeps >=4 steps
    # (lets v7x's two TensorCores both get work); grid handles ragged tails.
    tb = min(block_batch, _round_up(pl.cdiv(B, 4), 8))
    tb = max(8, _round_up(tb, 8))
    grid = (pl.cdiv(B, tb),)

    # Weights are tiny: cast once per call to the MXU compute dtype; biases
    # stay f32 for the epilogue.
    w1_c = w1.astype(compute_dtype)
    w2_c = w2.astype(compute_dtype)
    b1_2d = b1.reshape(1, hidden).astype(jnp.float32)
    b2_2d = b2.reshape(1, out_size).astype(jnp.float32)

    itemsize = jnp.dtype(x.dtype).itemsize
    cdt_size = jnp.dtype(compute_dtype).itemsize
    cost = pl.CostEstimate(
        flops=2 * B * (in_size * hidden + hidden * out_size),
        transcendentals=B * out_size,
        bytes_accessed=(B * in_size * itemsize            # x read
                        + B * out_size * 4                # out write (f32)
                        + (in_size * hidden + hidden * out_size) * cdt_size
                        + (hidden + out_size) * 4),       # weights + biases
    )

    kernel = functools.partial(_mlp_kernel, compute_dtype=compute_dtype)

    out = pl.pallas_call(
        kernel,
        out_shape=jax.ShapeDtypeStruct((B, out_size), jnp.float32),
        grid_spec=pltpu.PrefetchScalarGridSpec(
            num_scalar_prefetch=0,
            grid=grid,
            in_specs=[
                # activations stream over the batch grid axis (stored dtype)
                pl.BlockSpec((tb, in_size), lambda i: (i, 0)),
                # weights / biases: constant block index -> resident in VMEM
                pl.BlockSpec((in_size, hidden), lambda i: (0, 0)),
                pl.BlockSpec((1, hidden), lambda i: (0, 0)),
                pl.BlockSpec((hidden, out_size), lambda i: (0, 0)),
                pl.BlockSpec((1, out_size), lambda i: (0, 0)),
            ],
            out_specs=pl.BlockSpec((tb, out_size), lambda i: (i, 0)),
        ),
        compiler_params=pltpu.CompilerParams(
            # batch tiles are independent -> shard across v7x's 2 TensorCores
            dimension_semantics=("parallel",),
        ),
        cost_estimate=cost,
    )(x, w1_c, b1_2d, w2_c, b2_2d)

    return out


def _ref_forward(x, w1, b1, w2, b2):
    h = jnp.maximum(x @ w1 + b1, 0.0)
    return jax.nn.sigmoid(h @ w2 + b2)


if __name__ == "__main__":
    # Small shapes consistent with the module.
    batch = 8
    input_size = 16
    hidden_size = 32
    output_size = 4

    key = jax.random.PRNGKey(0)
    kx, kw1, kb1, kw2, kb2 = jax.random.split(key, 5)

    x = jax.random.normal(kx, (batch, input_size), dtype=jnp.float32)
    # PyTorch Linear weights (out, in) are stored pre-transposed as (in, out).
    w1 = jax.random.normal(kw1, (input_size, hidden_size), dtype=jnp.float32) * 0.1
    b1 = jax.random.normal(kb1, (hidden_size,), dtype=jnp.float32) * 0.1
    w2 = jax.random.normal(kw2, (hidden_size, output_size), dtype=jnp.float32) * 0.1
    b2 = jax.random.normal(kb2, (output_size,), dtype=jnp.float32) * 0.1

    # 1) f32 MXU path, tiny batch: strict numerical check vs. reference.
    out = jax.block_until_ready(
        agriculture_model_forward(x, w1, b1, w2, b2,
                                  compute_dtype=jnp.float32))
    ref = _ref_forward(x, w1, b1, w2, b2)
    assert out.shape == (batch, output_size)
    assert jnp.allclose(out, ref, atol=1e-5, rtol=1e-5)

    # 2) larger, non-tile-aligned batch with the default bf16 MXU path:
    #    exercises the batch grid, ragged last tile and resident weights.
    big_batch = 600
    xb = jax.random.normal(jax.random.PRNGKey(1), (big_batch, input_size),
                           dtype=jnp.float32)
    out_big = jax.block_until_ready(
        agriculture_model_forward(xb, w1, b1, w2, b2, block_batch=256))
    ref_big = _ref_forward(xb, w1, b1, w2, b2)
    assert out_big.shape == (big_batch, output_size)
    assert jnp.allclose(out_big, ref_big, atol=5e-2, rtol=0)

    print("KERNEL_OK")
</pallas_src>

<mosaic_0001>
module attributes {stable_mosaic.version = 11 : i64} {
  func.func @_mlp_kernel(%arg0: i32, %arg1: memref<8x16xf32, #tpu.memory_space<vmem>>, %arg2: memref<16x32xf32, #tpu.memory_space<vmem>>, %arg3: memref<1x32xf32, #tpu.memory_space<vmem>>, %arg4: memref<32x4xf32, #tpu.memory_space<vmem>>, %arg5: memref<1x4xf32, #tpu.memory_space<vmem>>, %arg6: memref<8x4xf32, #tpu.memory_space<vmem>>) attributes {dimension_semantics = [#tpu.dimension_semantics<parallel>], iteration_bounds = array<i64: 1>, scalar_prefetch = 0 : i64, scratch_operands = 0 : i64, tpu.core_type = #tpu.core_type<tc>, window_params = [{transform_indices = @transform_0, window_bounds = array<i64: 8, 16>}, {pipeline_mode = #tpu.pipeline_mode<synchronous>, transform_indices = @transform_1, window_bounds = array<i64: 16, 32>}, {pipeline_mode = #tpu.pipeline_mode<synchronous>, transform_indices = @transform_2, window_bounds = array<i64: 1, 32>}, {pipeline_mode = #tpu.pipeline_mode<synchronous>, transform_indices = @transform_3, window_bounds = array<i64: 32, 4>}, {pipeline_mode = #tpu.pipeline_mode<synchronous>, transform_indices = @transform_4, window_bounds = array<i64: 1, 4>}, {transform_indices = @transform_5, window_bounds = array<i64: 8, 4>}]} {
    %c0 = arith.constant 0 : index
    %c0_0 = arith.constant 0 : index
    %0 = vector.load %arg1[%c0, %c0_0] : memref<8x16xf32, #tpu.memory_space<vmem>>, vector<8x16xf32>
    %c0_1 = arith.constant 0 : index
    %c0_2 = arith.constant 0 : index
    %1 = vector.load %arg2[%c0_1, %c0_2] : memref<16x32xf32, #tpu.memory_space<vmem>>, vector<16x32xf32>
    %cst = arith.constant dense<0.000000e+00> : vector<8x32xf32>
    %2 = tpu.matmul %0, %1, %cst {dimension_numbers = #tpu.dot_dimension_numbers<[1], [0], [0], [1], [0, 0, 1, 1], [], []>} : vector<8x16xf32>, vector<16x32xf32>, vector<8x32xf32> -> vector<8x32xf32>
    %c0_3 = arith.constant 0 : index
    %c0_4 = arith.constant 0 : index
    %3 = vector.load %arg3[%c0_3, %c0_4] : memref<1x32xf32, #tpu.memory_space<vmem>>, vector<1x32xf32>
    %4 = vector.broadcast %3 : vector<1x32xf32> to vector<8x32xf32>
    %5 = arith.addf %2, %4 : vector<8x32xf32>
    %cst_5 = arith.constant 0.000000e+00 : f32
    %6 = vector.broadcast %cst_5 : f32 to vector<8x32xf32>
    %7 = arith.maximumf %5, %6 : vector<8x32xf32>
    %c0_6 = arith.constant 0 : index
    %c0_7 = arith.constant 0 : index
    %8 = vector.load %arg4[%c0_6, %c0_7] : memref<32x4xf32, #tpu.memory_space<vmem>>, vector<32x4xf32>
    %cst_8 = arith.constant dense<0.000000e+00> : vector<8x4xf32>
    %9 = tpu.matmul %7, %8, %cst_8 {dimension_numbers = #tpu.dot_dimension_numbers<[1], [0], [0], [1], [0, 0, 1, 1], [], []>} : vector<8x32xf32>, vector<32x4xf32>, vector<8x4xf32> -> vector<8x4xf32>
    %c0_9 = arith.constant 0 : index
    %c0_10 = arith.constant 0 : index
    %10 = vector.load %arg5[%c0_9, %c0_10] : memref<1x4xf32, #tpu.memory_space<vmem>>, vector<1x4xf32>
    %11 = vector.broadcast %10 : vector<1x4xf32> to vector<8x4xf32>
    %12 = arith.addf %9, %11 : vector<8x4xf32>
    %13 = arith.negf %12 : vector<8x4xf32>
    %14 = math.exp %13 : vector<8x4xf32>
    %cst_11 = arith.constant 1.000000e+00 : f32
    %15 = vector.broadcast %cst_11 : f32 to vector<8x4xf32>
    %16 = arith.addf %15, %14 : vector<8x4xf32>
    %17 = arith.divf %15, %16 : vector<8x4xf32>
    %c0_12 = arith.constant 0 : index
    %c0_13 = arith.constant 0 : index
    %18 = vector.load %arg6[%c0_12, %c0_13] : memref<8x4xf32, #tpu.memory_space<vmem>>, vector<8x4xf32>
    tpu.vector_store %arg6[%c0_12, %c0_13], %17 {strides = array<i32>} : memref<8x4xf32, #tpu.memory_space<vmem>>, vector<8x4xf32>,
    return
  }
  func.func @transform_0(%arg0: i32) -> (i32, i32) {
    %c0_i32 = arith.constant 0 : i32
    %c0_i32_0 = arith.constant 0 : i32
    return %arg0, %c0_i32 : i32, i32
  }
  func.func @transform_1(%arg0: i32) -> (i32, i32) {
    %c0_i32 = arith.constant 0 : i32
    %c0_i32_0 = arith.constant 0 : i32
    %c0_i32_1 = arith.constant 0 : i32
    return %c0_i32, %c0_i32_0 : i32, i32
  }
  func.func @transform_2(%arg0: i32) -> (i32, i32) {
    %c0_i32 = arith.constant 0 : i32
    %c0_i32_0 = arith.constant 0 : i32
    %c0_i32_1 = arith.constant 0 : i32
    return %c0_i32, %c0_i32_0 : i32, i32
  }
  func.func @transform_3(%arg0: i32) -> (i32, i32) {
    %c0_i32 = arith.constant 0 : i32
    %c0_i32_0 = arith.constant 0 : i32
    %c0_i32_1 = arith.constant 0 : i32
    return %c0_i32, %c0_i32_0 : i32, i32
  }
  func.func @transform_4(%arg0: i32) -> (i32, i32) {
    %c0_i32 = arith.constant 0 : i32
    %c0_i32_0 = arith.constant 0 : i32
    %c0_i32_1 = arith.constant 0 : i32
    return %c0_i32, %c0_i32_0 : i32, i32
  }
  func.func @transform_5(%arg0: i32) -> (i32, i32) {
    %c0_i32 = arith.constant 0 : i32
    %c0_i32_0 = arith.constant 0 : i32
    return %arg0, %c0_i32 : i32, i32
  }
}

</mosaic_0001>

<bundles_post_ra>
// kernel: tpu_custom_call.1
= control target key start
LH: loop header
LB: loop body
LE: loop exit
PB: predicated region body
PF: predicated region fallthrough
CT: control target
= control target key end

     0   :  { %v239_v0 = vmov 0.0   ;;  %vm240_vm0 = vmmov 0   ;;  %vm30_vm1 = vcmask 130048   ;;  %vm116_vm2 = vcmask 261120   ;;  %s301_s1 = inlined_call_operand.vmem [shape: f32[16,32], index: 1, kind: input, shape index: {}]   ;;  %s302_s0 = inlined_call_operand.vmem [shape: f32[8,16], index: 0, kind: input, shape index: {}]   ;;  %s303_s3 = inlined_call_operand.vmem [shape: f32[32,4], index: 3, kind: input, shape index: {}]   ;;  %s304_s2 = inlined_call_operand.vmem [shape: f32[1,32], index: 2, kind: input, shape index: {}]   ;;  %s305_s4 = inlined_call_operand.vmem [shape: f32[1,4], index: 4, kind: input, shape index: {}]   ;;  %s306_s5 = inlined_call_operand.vmem [shape: f32[8,4], index: 5, kind: output, shape index: {}]  }
   0x1   :  { %215 = vmatprep.subr.mxu0 %v239_v0  ;;  %v22_v1 = vld [vmem:[%s301_s1 + $0x8] sm:$0xff]  ;;  %v21_v2 = vld [vmem:[%s301_s1] sm:$0xff]  ;;  %219 = vmatprep.mubr.msk.f32.mxu0 %vm240_vm0, %v239_v0  ;;  %v108_v4 = vld [vmem:[%s303_s3 + $0x18] sm:$0xff]  ;;  %vm196_vm3 = vcmask 31744  }
   0x2   :  { %216 = vmatpush3.msra.mxu0 %v22_v1  ;;  %v20_v3 = vld [vmem:[%s302_s0] sm:$0xff]  ;;  %222 = vmatprep.subr.mxu1 %v239_v0  ;;  %v107_v5 = vld [vmem:[%s303_s3 + $0x10] sm:$0xff]  ;;  %v106_v6 = vld [vmem:[%s303_s3 + $0x8] sm:$0xff] }
   0x3   :  { %217 = vmatprep.subr.mxu0 %v239_v0  ;;  %223 = vmatpush3.msra.mxu1 %v108_v4  ;;  %v105_v7 = vld [vmem:[%s303_s3] sm:$0xff] }
   0x4   :  { %218 = vmatpush3.msra.mxu0 %v21_v2  ;;  %224 = vmatprep.subr.mxu1 %v239_v0  ;;  %v202_v8 = vld [vmem:[%s304_s2] ss:$0 sm:$0xff] }
   0x5   :  { %220 = vmatmul.mubr.msk.f32.vlgmr.msra.gmra.mxu0 %vm30_vm1, %v20_v3  ;;  %230 = vmatprep.mubr.msk.f32.mxu1 %vm240_vm0, %v239_v0  ;;  %v204_v13 = vld [vmem:[%s305_s4] ss:$0 sm:$0xff] }
   0x6   :  { %225 = vmatpush3.msra.mxu1 %v107_v5 }
   0x7   :  { %226 = vmatprep.subr.mxu1 %v239_v0 }
   0x8   :  { %227 = vmatpush3.msra.mxu1 %v106_v6 }
   0x9   :  { %228 = vmatprep.subr.mxu1 %v239_v0 }
   0xa   :  { %229 = vmatpush3.msra.mxu1 %v105_v7 }
  0xc5   :  { %v100_v9 = vpop.f32.mrf.mxu0 }
  0xc6   :  { %v101_v10 = vadd.f32 %v202_v8, %v100_v9 }
  0xc7   :  { %v221_v11 = vpop.f32.mrf.mxu0 }
  0xc8   :  { %v104_v12 = vmax.f32 %v101_v10, 0.0 }
  0xca   :  { %231 = vmatmul.mubr.msk.f32.vlgmr.msra.gmra.mxu1 %vm116_vm2, %v104_v12 }
 0x18a   :  { %v186_v14 = vpop.f32.mrf.mxu1 }
 0x18b   :  { %v187_v15 = vadd.f32 %v204_v13, %v186_v14 }
 0x18c   :  { %v232_v16 = vpop.f32.mrf.mxu1 }
 0x18d   :  { %v206_v17 = vmul.f32 -1.442695, %v187_v15 }
 0x18f   :  { %235 = vpow2.f32 %v206_v17 }
 0x19c   :  { %v236_v18 = vpop.eup %235 }
 0x19d   :  { %v193_v19 = vadd.f32 1.0, %v236_v18 }
 0x19f   :  { %237 = vrcp.f32 %v193_v19 }
 0x1ac   :  { %v238_v20 = vpop.eup %237 }
 0x1ad   :  { %197 = vst.msk [vmem:[%s306_s5] sm:$0xff] %vm196_vm3, %v238_v20 }

</bundles_post_ra>
